<compile_context>
chip_gen: v7x
topology: tpu7x:2x2x1
jax: 0.10.0
libtpu: 0.0.40
codegen_flags: <defaults>
</compile_context>

<pallas_src>
import jax
import jax.numpy as jnp
from jax.experimental import pallas as pl
from jax.experimental.pallas import tpu as pltpu


def _build_encoding(patch_num: int, dim: int, dtype=jnp.float32) -> jnp.ndarray:
    """Sinusoidal table identical to the PyTorch __init__ (built once at init)."""
    # Same latent limitation as the PyTorch reference: odd dim would shape-mismatch.
    assert dim % 2 == 0, "PositionalEncoding requires an even dim"
    pos = jnp.arange(patch_num, dtype=jnp.float32)[:, None]          # (N, 1)
    _2i = jnp.arange(0, dim, 2, dtype=jnp.float32)                   # (D/2,)
    angle = pos / jnp.power(10000.0, _2i / dim)                      # (N, D/2)
    enc = jnp.zeros((patch_num, dim), dtype=jnp.float32)
    enc = enc.at[:, 0::2].set(jnp.sin(angle))
    enc = enc.at[:, 1::2].set(jnp.cos(angle))
    # Hoisted cast: table is stored once in the model's compute dtype
    # (deliberate trade-off: bf16 table precision matches a bf16 module buffer).
    return enc.astype(dtype)


def _add_pe_kernel(x_ref, enc_ref, o_ref):
    # x_ref / o_ref: (BB, TM) tile; enc_ref: (1, TM), broadcast over the batch
    # sublanes. Single VPU add per grid step — purely DMA/HBM bound.
    o_ref[...] = (x_ref[...] + enc_ref[...]).astype(o_ref.dtype)


def _device_kind() -> str:
    try:
        return jax.devices()[0].device_kind.lower()
    except Exception:
        return ""


def positional_encoding_forward(x: jnp.ndarray, enc: jnp.ndarray,
                                *, target_block_bytes: int | None = None,
                                donate_x: bool = False) -> jnp.ndarray:
    B, N, D = x.shape
    assert enc.shape == (N, D)
    if enc.dtype != x.dtype:
        # No-op when the table was cached in the compute dtype at init.
        enc = enc.astype(x.dtype)

    kind = _device_kind()
    is_v7x = ("v7" in kind) or ("tpu7" in kind)
    is_v6 = "v6" in kind

    if target_block_bytes is None:
        # v5e scoped-VMEM default is 16 MiB -> 2 MiB blocks (4 bufs = 8 MiB);
        # v6e/v7x (32 MiB scoped default) -> 4 MiB blocks (~86% roofline,
        # 2-4x fewer 0.35us grid steps). Unknown device -> conservative 2 MiB.
        target_block_bytes = (4 << 20) if (is_v7x or is_v6) else (2 << 20)

    itemsize = jnp.dtype(x.dtype).itemsize
    sub = max(8, 32 // itemsize)          # sublane pack: 8 f32, 16 bf16, 32 int8
    M = N * D
    row_bytes = M * itemsize

    # Flatten trailing dims: lane-dense output regardless of D; contiguous
    # reshape is a free bitcast in XLA.
    x2 = x.reshape(B, M)
    enc2 = enc.reshape(1, M)

    # ---- tile sizing: aim for ~target_block_bytes per x block --------------
    if row_bytes <= target_block_bytes:
        TM = M
        BB = max(1, target_block_bytes // row_bytes)
        if BB >= B:
            BB = B
        else:
            BB = min(B, max(sub, (BB // sub) * sub))     # dtype-aware sublane pack
    else:
        BB = min(B, sub)
        TM = min(M, max(128, (target_block_bytes // (BB * itemsize) // 128) * 128))

    mb = pl.cdiv(M, TM)
    bb = pl.cdiv(B, BB)

    # v7x has 2 TensorCores: ensure >= 2 parallel grid steps, splitting the
    # flattened M axis (keeps sublane packing and 128-lane alignment intact).
    # Single-TC v5e/v6e keep the single step (grid is a serial loop there).
    if is_v7x and mb * bb < 2:
        tm_half = ((M + 1) // 2 + 127) // 128 * 128
        if tm_half < M:
            TM = tm_half
            mb = pl.cdiv(M, TM)
        elif B >= 2 * sub:
            BB = min(B, max(sub, ((pl.cdiv(B, 2) + sub - 1) // sub) * sub))
            bb = pl.cdiv(B, BB)

    cost = pl.CostEstimate(
        flops=B * M,
        transcendentals=0,
        bytes_accessed=(2 * B * M + M) * itemsize,
    )

    out2 = pl.pallas_call(
        _add_pe_kernel,
        out_shape=jax.ShapeDtypeStruct((B, M), x.dtype),
        grid_spec=pltpu.PrefetchScalarGridSpec(
            num_scalar_prefetch=0,
            # m is the OUTER (slow) axis, b the INNER (fast) axis: the enc block
            # index only changes when m changes, so enc is fetched exactly one
            # full pass per call while x streams in large lane-dense tiles.
            grid=(mb, bb),
            in_specs=[
                pl.BlockSpec((BB, TM), lambda m, b: (b, m)),   # x
                pl.BlockSpec((1, TM), lambda m, b: (0, m)),    # enc
            ],
            out_specs=pl.BlockSpec((BB, TM), lambda m, b: (b, m)),
        ),
        compiler_params=pltpu.CompilerParams(
            dimension_semantics=("parallel", "parallel"),
        ),
        cost_estimate=cost,
        # In-place add when the caller donates x (no extra B*N*D HBM buffer).
        input_output_aliases=({0: 0} if donate_x else {}),
    )(x2, enc2)

    return out2.reshape(B, N, D)


if __name__ == "__main__":
    batch, patch_num, dim = 4, 16, 128

    key = jax.random.PRNGKey(0)
    x = jax.random.normal(key, (batch, patch_num, dim), dtype=jnp.float32)

    # Table built once at "init" in the compute dtype (cast hoisted out of forward).
    enc_f32 = _build_encoding(patch_num, dim, dtype=jnp.float32)

    # f32 path
    out = jax.block_until_ready(positional_encoding_forward(x, enc_f32))
    ref = x + enc_f32[None, :, :]
    assert out.shape == (batch, patch_num, dim) and out.dtype == x.dtype
    assert jnp.allclose(out, ref, atol=1e-6), "f32 mismatch vs reference"

    # bf16 path (table cached in bf16 at init — matches a bf16 module buffer)
    xb = x.astype(jnp.bfloat16)
    enc_bf16 = _build_encoding(patch_num, dim, dtype=jnp.bfloat16)
    outb = jax.block_until_ready(positional_encoding_forward(xb, enc_bf16))
    refb = xb + enc_bf16[None, :, :]
    assert outb.dtype == jnp.bfloat16
    assert jnp.allclose(outb.astype(jnp.float32), refb.astype(jnp.float32),
                        atol=1e-2), "bf16 mismatch vs reference"

    print("KERNEL_OK")
</pallas_src>

<mosaic_0001>
module attributes {stable_mosaic.version = 11 : i64} {
  func.func @_add_pe_kernel(%arg0: i32, %arg1: i32, %arg2: memref<4x2048xf32, #tpu.memory_space<vmem>>, %arg3: memref<1x2048xf32, #tpu.memory_space<vmem>>, %arg4: memref<4x2048xf32, #tpu.memory_space<vmem>>) attributes {dimension_semantics = [#tpu.dimension_semantics<parallel>, #tpu.dimension_semantics<parallel>], iteration_bounds = array<i64: 1, 1>, scalar_prefetch = 0 : i64, scratch_operands = 0 : i64, tpu.core_type = #tpu.core_type<tc>, window_params = [{transform_indices = @transform_0, window_bounds = array<i64: 4, 2048>}, {transform_indices = @transform_1, window_bounds = array<i64: 1, 2048>}, {transform_indices = @transform_2, window_bounds = array<i64: 4, 2048>}]} {
    %c0 = arith.constant 0 : index
    %c0_0 = arith.constant 0 : index
    %0 = vector.load %arg2[%c0, %c0_0] : memref<4x2048xf32, #tpu.memory_space<vmem>>, vector<4x2048xf32>
    %c0_1 = arith.constant 0 : index
    %c0_2 = arith.constant 0 : index
    %1 = vector.load %arg3[%c0_1, %c0_2] : memref<1x2048xf32, #tpu.memory_space<vmem>>, vector<1x2048xf32>
    %2 = vector.broadcast %1 : vector<1x2048xf32> to vector<4x2048xf32>
    %3 = arith.addf %0, %2 : vector<4x2048xf32>
    %c0_3 = arith.constant 0 : index
    %c0_4 = arith.constant 0 : index
    %4 = vector.load %arg4[%c0_3, %c0_4] : memref<4x2048xf32, #tpu.memory_space<vmem>>, vector<4x2048xf32>
    tpu.vector_store %arg4[%c0_3, %c0_4], %3 {strides = array<i32>} : memref<4x2048xf32, #tpu.memory_space<vmem>>, vector<4x2048xf32>,
    return
  }
  func.func @transform_0(%arg0: i32, %arg1: i32) -> (i32, i32) {
    %c0_i32 = arith.constant 0 : i32
    return %arg1, %arg0 : i32, i32
  }
  func.func @transform_1(%arg0: i32, %arg1: i32) -> (i32, i32) {
    %c0_i32 = arith.constant 0 : i32
    %c0_i32_0 = arith.constant 0 : i32
    return %c0_i32, %arg0 : i32, i32
  }
  func.func @transform_2(%arg0: i32, %arg1: i32) -> (i32, i32) {
    %c0_i32 = arith.constant 0 : i32
    return %arg1, %arg0 : i32, i32
  }
}

</mosaic_0001>

<bundles_post_ra>
// kernel: tpu_custom_call.1
= control target key start
LH: loop header
LB: loop body
LE: loop exit
PB: predicated region body
PF: predicated region fallthrough
CT: control target
= control target key end

     0   :  { %7 = vsyncpa [#allocation3], 0  ;;  %s289_s0 = inlined_call_operand.hbm [shape: f32[4,2048], index: 0, kind: input, shape index: {}]   ;;  %s290_s1 = inlined_call_operand.hbm [shape: f32[1,2048], index: 1, kind: input, shape index: {}]   ;;  %s291_s2 = inlined_call_operand.hbm [shape: f32[4,2048], index: 2, kind: output, shape index: {}]  }
   0x1   :  { %8 = vsyncpa [#allocation6], 0 }
   0x2   :  { %9 = vsyncpa [#allocation4], 0  ;;  %s235_s9 = smov [#allocation2]   ;;  %s236_s11 = smov [#allocation5]  }
   0x3   :  { %s16_s10 = sshll.u32 %s235_s9, 4  ;;  %s26_s12 = sshll.u32 %s236_s11, 4  ;;  %s17_s10 = int_to_ptr.vmem [resolvable:$true] %s16_s10  ;;  %s27_s12 = int_to_ptr.vmem [resolvable:$true] %s26_s12 }
   0x4   :  { %s163_s15 = scalar_lea.hbm %s289_s0, 1024 }
   0x5   :  { %p164_p0 = scmp.ne.s32.totalorder %s289_s0, %s163_s15  ;;  %p167_p1 = scmp.lt.u32.totalorder %s163_s15, %s289_s0 }
   0x7   :  { %p169_p2 = pnand %p167_p1, %p164_p0 }
   0x9   :  { %172 = shalt.err (!%p169_p2)
}
   0xa   :  { %s173_s20 = scalar_lea.vmem %s17_s10, 1024  ;;  %p178_p4 = scmp.lt.s32.totalorder %s17_s10, %s17_s10 }
   0xb   :  { %p174_p3 = scmp.ne.s32.totalorder %s17_s10, %s173_s20  ;;  %p179_p5 = scmp.lt.s32.totalorder %s173_s20, %s173_s20 }
   0xd   :  { %p180_p6 = por %p179_p5, %p178_p4 }
   0xf   :  { %p181_p7 = pnand %p180_p6, %p174_p3 }
  0x11   :  { %184 = shalt.err (!%p181_p7)
}
  0x12   :  { %19 = dma.hbm_to_vmem [thread:$0]  %s289_s0, 1024, %s17_s10, [#allocation3]  }
  0x13   :  { %s185_s25 = scalar_lea.hbm %s290_s1, 256 }
  0x14   :  { %p186_p8 = scmp.ne.s32.totalorder %s290_s1, %s185_s25  ;;  %p189_p9 = scmp.lt.u32.totalorder %s185_s25, %s290_s1 }
  0x16   :  { %p191_p10 = pnand %p189_p9, %p186_p8 }
  0x18   :  { %194 = shalt.err (!%p191_p10)
}
  0x19   :  { %s195_s30 = scalar_lea.vmem %s27_s12, 256  ;;  %p200_p12 = scmp.lt.s32.totalorder %s27_s12, %s27_s12 }
  0x1a   :  { %p196_p11 = scmp.ne.s32.totalorder %s27_s12, %s195_s30  ;;  %p201_p13 = scmp.lt.s32.totalorder %s195_s30, %s195_s30 }
  0x1c   :  { %p202_p0 = por %p201_p13, %p200_p12 }
  0x1e   :  { %p203_p1 = pnand %p202_p0, %p196_p11 }
  0x20   :  { %206 = shalt.err (!%p203_p1)
}
  0x21   :  { %29 = dma.hbm_to_vmem [thread:$0]  %s290_s1, 256, %s27_s12, [#allocation6]  }
  0x22   :  { %229 = dma.done.wait [#allocation3], 1024  }
  0x23   :  { %230 = vsyncadd [#allocation3], 4294966272 }
  0x24   :  { %231 = dma.done.wait [#allocation6], 256  }
  0x25   :  { %232 = vsyncadd [#allocation6], 4294967040  ;;  %v48_v0 = vlaneseq  ;;  %v44_v10 = vld [vmem:[#allocation5] sm:$0xff]  ;;  %v37_v16 = vld [vmem:[#allocation2 + $0x8] sm:$0xff]  ;;  %s237_s1 = smov [#allocation7]  }
  0x26   :  { %v36_v15 = vld [vmem:[#allocation2] sm:$0xff]  ;;  %v45_v21 = vld [vmem:[#allocation5 + $0x8] sm:$0xff]  ;;  %v38_v24 = vld [vmem:[#allocation2 + $0x10] sm:$0xff]  ;;  %s150_s4 = sshll.u32 %s237_s1, 4  ;;  %s151_s4 = int_to_ptr.vmem [resolvable:$true] %s150_s4 }
  0x27   :  { %v49_v1 = vshrl.u32 %v48_v0, 7  ;;  %v39_v25 = vld [vmem:[#allocation2 + $0x18] sm:$0xff]  ;;  %v40_v30 = vld [vmem:[#allocation2 + $0x20] sm:$0xff]  ;;  %v41_v36 = vld [vmem:[#allocation2 + $0x28] sm:$0xff]  ;;  %s207_s5 = scalar_lea.vmem %s151_s4, 1024  ;;  %p212_p3 = scmp.lt.s32.totalorder %s151_s4, %s151_s4 }
  0x28   :  { %v42_v43 = vld [vmem:[#allocation2 + $0x30] sm:$0xff]  ;;  %v43_v48 = vld [vmem:[#allocation2 + $0x38] sm:$0xff]  ;;  %p208_p2 = scmp.ne.s32.totalorder %s151_s4, %s207_s5  ;;  %p213_p4 = scmp.lt.s32.totalorder %s207_s5, %s207_s5 }
  0x29   :  { %v50_v2 = vsub.s32 0, %v49_v1  ;;  %v54_v3 = vsub.s32 1, %v49_v1  ;;  %v58_v4 = vsub.s32 2, %v49_v1  ;;  %v62_v5 = vsub.s32 3, %v49_v1 }
  0x2a   :  { %v66_v6 = vsub.s32 4, %v49_v1  ;;  %v70_v7 = vsub.s32 5, %v49_v1  ;;  %v74_v8 = vsub.s32 6, %v49_v1  ;;  %v78_v9 = vsub.s32 7, %v49_v1  ;;  %p214_p5 = por %p213_p4, %p212_p3 }
  0x2b   :  { %v51_v11 = vrot.slane %v44_v10, %v50_v2  ;;  %v55_v12 = vrot.slane %v44_v10, %v54_v3  ;;  %v59_v13 = vrot.slane %v44_v10, %v58_v4  ;;  %v63_v14 = vrot.slane %v44_v10, %v62_v5 }
  0x2c   :  { %v67_v17 = vrot.slane %v44_v10, %v66_v6  ;;  %v71_v18 = vrot.slane %v44_v10, %v70_v7  ;;  %v75_v19 = vrot.slane %v44_v10, %v74_v8  ;;  %v79_v20 = vrot.slane %v44_v10, %v78_v9  ;;  %p215_p6 = pnand %p214_p5, %p208_p2 }
  0x2d   :  { %v112_v22 = vcombine.low %v51_v11, %v55_v12  ;;  %v113_v23 = vcombine.low %v59_v13, %v63_v14  ;;  %v83_v26 = vrot.slane %v45_v21, %v50_v2  ;;  %v87_v27 = vrot.slane %v45_v21, %v54_v3 }
  0x2e   :  { %v114_v28 = vcombine.low %v67_v17, %v71_v18  ;;  %v115_v29 = vcombine.low %v75_v19, %v79_v20  ;;  %v91_v31 = vrot.slane %v45_v21, %v58_v4  ;;  %v95_v32 = vrot.slane %v45_v21, %v62_v5 }
  0x2f   :  { %v128_v33 = vadd.f32 %v112_v22, %v36_v15  ;;  %v129_v34 = vadd.f32 %v113_v23, %v37_v16  ;;  %v116_v35 = vcombine.low %v83_v26, %v87_v27  ;;  %v99_v37 = vrot.slane %v45_v21, %v66_v6 }
  0x30   :  { %v130_v38 = vadd.f32 %v114_v28, %v38_v24  ;;  %v131_v39 = vadd.f32 %v115_v29, %v39_v25  ;;  %v117_v40 = vcombine.low %v91_v31, %v95_v32  ;;  %v103_v41 = vrot.slane %v45_v21, %v70_v7 }
  0x31   :  { %136 = vst [vmem:[#allocation7] sm:$0xff] %v128_v33  ;;  %137 = vst [vmem:[#allocation7 + $0x8] sm:$0xff] %v129_v34  ;;  %v132_v42 = vadd.f32 %v116_v35, %v40_v30  ;;  %v107_v44 = vrot.slane %v45_v21, %v74_v8  ;;  %v111_v45 = vrot.slane %v45_v21, %v78_v9 }
  0x32   :  { %138 = vst [vmem:[#allocation7 + $0x10] sm:$0xff] %v130_v38  ;;  %139 = vst [vmem:[#allocation7 + $0x18] sm:$0xff] %v131_v39  ;;  %v133_v46 = vadd.f32 %v117_v40, %v41_v36  ;;  %v118_v47 = vcombine.low %v99_v37, %v103_v41 }
  0x33   :  { %140 = vst [vmem:[#allocation7 + $0x20] sm:$0xff] %v132_v42  ;;  %v119_v49 = vcombine.low %v107_v44, %v111_v45 }
  0x34   :  { %141 = vst [vmem:[#allocation7 + $0x28] sm:$0xff] %v133_v46  ;;  %v134_v50 = vadd.f32 %v118_v47, %v42_v43 }
  0x35   :  { %v135_v51 = vadd.f32 %v119_v49, %v43_v48 }
  0x36   :  { %142 = vst [vmem:[#allocation7 + $0x30] sm:$0xff] %v134_v50 }
  0x37   :  { %143 = vst [vmem:[#allocation7 + $0x38] sm:$0xff] %v135_v51 }
  0x38   :  { %218 = shalt.err (!%p215_p6)
}
  0x39   :  { %s219_s8 = scalar_lea.hbm %s291_s2, 1024 }
  0x3a   :  { %p220_p7 = scmp.ne.s32.totalorder %s291_s2, %s219_s8  ;;  %p223_p8 = scmp.lt.u32.totalorder %s219_s8, %s291_s2 }
  0x3c   :  { %p225_p9 = pnand %p223_p8, %p220_p7 }
  0x3e   :  { %228 = shalt.err (!%p225_p9)
}
  0x3f   :  { %153 = dma.vmem_to_hbm [thread:$0]  %s151_s4, 1024, %s291_s2, [#allocation4]  }
  0x40   :  { %233 = dma.done.wait [#allocation4], 1024  }
  0x41   :  { %234 = vsyncadd [#allocation4], 4294966272 }
  0x42   :  { %157 = vsyncpa [#allocation3], 1 }
  0x43   :  { %158 = vsyncpa [#allocation6], 1 }
  0x44   :  { %159 = vsyncpa [#allocation4], 1 }

</bundles_post_ra>
